<compile_context>
chip_gen: v7x
topology: tpu7x:2x2x1
jax: 0.10.0
libtpu: 0.0.40
codegen_flags: <defaults>
</compile_context>

<pallas_src>
import functools

import jax
import jax.numpy as jnp
from jax.experimental import pallas as pl
from jax.experimental.pallas import tpu as pltpu

_LANE = 128      # vreg lane width
_SUBLANE = 16    # bf16 packs 2 rows/sublane; keep batch tiles 16-aligned


def _round_up(x, m):
    return ((x + m - 1) // m) * m


def _fused_mlp_kernel(*refs, num_layers: int):
    """Fused (Linear x N) + Sigmoid for one batch tile.

    refs = (x_ref, w0_ref, b0_ref, w1_ref, b1_ref, ..., o_ref).
    Intermediate activations never touch HBM; they live in vregs.
    """
    x_ref = refs[0]
    o_ref = refs[-1]
    param_refs = refs[1:-1]

    h = x_ref[...]                                    # bf16 [tm, Fin0]
    for i in range(num_layers):
        w = param_refs[2 * i][...]                    # bf16 [Fin_i, Fout_i(pad)]
        b = param_refs[2 * i + 1][...]                # f32  [1, Fout_i(pad)]
        if h.dtype != jnp.bfloat16:
            h = h.astype(jnp.bfloat16)
        # bf16 MXU inputs, f32 accumulation; bias add stays on the f32 VALU path.
        h = jnp.dot(h, w, preferred_element_type=jnp.float32) + b
    # Sigmoid = 1 / (1 + exp(-h)): exp and the approx reciprocal both go to
    # the EUP slot, keeping the VALU free of a divide / Newton sequence.
    o_ref[...] = pl.reciprocal(1.0 + jnp.exp(-h), approx=True).astype(o_ref.dtype)


def _resident_spec(shape):
    """BlockSpec for a grid-invariant, fully VMEM-resident operand.

    Single-buffered (pl.Buffered(1)) since its index_map is constant across
    the grid. Falls back to the default double-buffered spec if this JAX
    version's BlockSpec does not expose `pipeline_mode`.
    """
    index_map = lambda *_: (0,) * len(shape)
    try:
        return pl.BlockSpec(shape, index_map, pipeline_mode=pl.Buffered(1))
    except TypeError:
        return pl.BlockSpec(shape, index_map)


def _pad_params(params):
    """Zero-pad every layer's Fout (and the next layer's Fin) to 128 lanes.

    Exact: padded weight columns + zero bias produce zero activations, which
    then hit zero-padded rows of the next weight -> no contribution. fin0 of
    the first layer is left unpadded so the x DMA footprint is unchanged.
    """
    padded = []
    fin_pad = params[0][0].shape[0]
    fout_pad = params[-1][0].shape[1]
    for w, b in params:
        fin, fout = w.shape
        fout_pad = _round_up(fout, _LANE)
        w_p = jnp.zeros((fin_pad, fout_pad), w.dtype).at[:fin, :fout].set(w)
        b_p = jnp.zeros((1, fout_pad), b.dtype).at[:, :fout].set(b.reshape(1, fout))
        padded.append((w_p, b_p))
        fin_pad = fout_pad
    return padded, fout_pad


def mlp_forward_pallas(x, params, *, block_b: int = 1024):
    """Forward pass of the whole MLP as a single pallas_call.

    x: [B, Fin0] f32.
    params: list of (w, b) with w: bf16 [Fin_i, Fout_i], b: f32 [1, Fout_i].
    Returns sigmoid(...(x @ W0 + b0)... @ Wn-1 + bn-1) as f32 [B, Fout_last].
    """
    assert block_b % _SUBLANE == 0, "block_b must be a multiple of 16"
    B, fin0 = x.shape
    assert params[0][0].shape[0] == fin0
    fout_last = params[-1][0].shape[1]
    num_layers = len(params)

    padded, fout_pad = _pad_params(params)

    # Batch tile: as large as possible (fewer fixed-cost grid steps), but
    # never let the grid collapse to a single step when B is big enough to
    # split -- on v7x both TensorCores then get a "parallel" step each.
    tm = min(block_b, B)
    if tm == B and B >= 2 * _SUBLANE:
        tm = _round_up(pl.cdiv(B, 2), _SUBLANE)
    grid = (pl.cdiv(B, tm),)

    # x is the only operand whose HBM traffic scales with B -> feed it in bf16.
    x_bf16 = x.astype(jnp.bfloat16)

    in_specs = [pl.BlockSpec((tm, fin0), lambda i: (i, 0))]   # batch-tiled x
    flat_params = []
    for w, b in padded:
        in_specs.append(_resident_spec(w.shape))              # resident weight
        in_specs.append(_resident_spec(b.shape))              # resident bias
        flat_params += [w, b]

    kernel = functools.partial(_fused_mlp_kernel, num_layers=num_layers)

    # Explicit VMEM budget: single-buffered resident params + double-buffered
    # bf16 x tile + double-buffered f32 out tile + headroom for internals.
    resident_bytes = sum(int(w.size) * 2 + int(b.size) * 4 for w, b in padded)
    tile_bytes = tm * fin0 * 2 * 2 + tm * fout_pad * 4 * 2
    vmem_limit = int(min(max(resident_bytes + tile_bytes + (8 << 20), 32 << 20),
                         100 << 20))
    # TODO(synk): once resident_bytes approaches ~40 MiB (large hidden sizes on
    # v7x's 64 MiB VMEM), switch to a K/N-tiled grid with an f32 VMEM
    # accumulator scratch instead of fully-resident weights.

    out_pad = pl.pallas_call(
        kernel,
        out_shape=jax.ShapeDtypeStruct((B, fout_pad), jnp.float32),
        grid_spec=pltpu.PrefetchScalarGridSpec(
            num_scalar_prefetch=0,
            grid=grid,
            in_specs=in_specs,
            out_specs=pl.BlockSpec((tm, fout_pad), lambda i: (i, 0)),
        ),
        compiler_params=pltpu.CompilerParams(
            dimension_semantics=("parallel",),   # megacore sharding on v7x
            vmem_limit_bytes=vmem_limit,
        ),
    )(x_bf16, *flat_params)

    # Strip the lane-padding columns (wrapper-side slice, tiny).
    return out_pad[:, :fout_last]


def init_params(sizes, key):
    """Deterministic init mirroring PyTorch nn.Linear default
    (uniform in [-1/sqrt(fan_in), 1/sqrt(fan_in)]).
    Weights are stored in bf16 (MXU-native); biases stay f32."""
    params = []
    for i in range(len(sizes) - 1):
        key, kw, kb = jax.random.split(key, 3)
        fan_in = sizes[i]
        bound = 1.0 / (fan_in ** 0.5)
        w = jax.random.uniform(
            kw, (sizes[i], sizes[i + 1]), jnp.float32, minval=-bound, maxval=bound
        ).astype(jnp.bfloat16)
        b = jax.random.uniform(
            kb, (1, sizes[i + 1]), jnp.float32, minval=-bound, maxval=bound
        )
        params.append((w, b))
    return params


def _reference_forward_bf16(x, params):
    """Pure-JAX reference with the same bf16-matmul / f32-accumulate recipe."""
    h = x
    for w, b in params:
        h = jnp.dot(h.astype(jnp.bfloat16), w,
                    preferred_element_type=jnp.float32) + b
    return jax.nn.sigmoid(h)


def _reference_forward_f32(x, params):
    """Pure-f32 reference (PyTorch semantics) for a loose sanity check."""
    h = x
    for w, b in params:
        h = h @ w.astype(jnp.float32) + b
    return jax.nn.sigmoid(h)


if __name__ == "__main__":
    sizes = [32, 64, 16]          # MLP layer widths (the module's `sizes` arg)
    batch = 128

    key = jax.random.PRNGKey(0)
    key, kx = jax.random.split(key)
    x = jax.random.normal(kx, (batch, sizes[0]), dtype=jnp.float32)

    params = init_params(sizes, key)

    out = mlp_forward_pallas(x, params)
    out = jax.block_until_ready(out)

    assert out.shape == (batch, sizes[-1])
    # Check vs a reference using the same bf16-MXU / f32-accum recipe
    # (tolerance allows the approx-EUP reciprocal in the sigmoid).
    ref_bf16 = _reference_forward_bf16(x, params)
    assert jnp.allclose(out, ref_bf16, atol=5e-3, rtol=5e-3)
    # Loose check vs pure-f32 (PyTorch-exact) math.
    ref_f32 = _reference_forward_f32(x, params)
    assert jnp.allclose(out, ref_f32, atol=5e-2, rtol=5e-2)

    print("KERNEL_OK")
</pallas_src>

<mosaic_0001>
module attributes {stable_mosaic.version = 11 : i64} {
  func.func @_fused_mlp_kernel(%arg0: i32, %arg1: memref<64x32xbf16, #tpu.memory_space<vmem>>, %arg2: memref<32x128xbf16, #tpu.memory_space<vmem>>, %arg3: memref<1x128xf32, #tpu.memory_space<vmem>>, %arg4: memref<128x128xbf16, #tpu.memory_space<vmem>>, %arg5: memref<1x128xf32, #tpu.memory_space<vmem>>, %arg6: memref<64x128xf32, #tpu.memory_space<vmem>>) attributes {dimension_semantics = [#tpu.dimension_semantics<parallel>], iteration_bounds = array<i64: 2>, scalar_prefetch = 0 : i64, scratch_operands = 0 : i64, tpu.core_type = #tpu.core_type<tc>, window_params = [{transform_indices = @transform_0, window_bounds = array<i64: 64, 32>}, {pipeline_mode = #tpu.pipeline_mode<synchronous>, transform_indices = @transform_1, window_bounds = array<i64: 32, 128>}, {pipeline_mode = #tpu.pipeline_mode<synchronous>, transform_indices = @transform_2, window_bounds = array<i64: 1, 128>}, {pipeline_mode = #tpu.pipeline_mode<synchronous>, transform_indices = @transform_3, window_bounds = array<i64: 128, 128>}, {pipeline_mode = #tpu.pipeline_mode<synchronous>, transform_indices = @transform_4, window_bounds = array<i64: 1, 128>}, {transform_indices = @transform_5, window_bounds = array<i64: 64, 128>}]} {
    %c0 = arith.constant 0 : index
    %c0_0 = arith.constant 0 : index
    %0 = vector.load %arg1[%c0, %c0_0] : memref<64x32xbf16, #tpu.memory_space<vmem>>, vector<64x32xbf16>
    %c0_1 = arith.constant 0 : index
    %c0_2 = arith.constant 0 : index
    %1 = vector.load %arg2[%c0_1, %c0_2] : memref<32x128xbf16, #tpu.memory_space<vmem>>, vector<32x128xbf16>
    %c0_3 = arith.constant 0 : index
    %c0_4 = arith.constant 0 : index
    %2 = vector.load %arg3[%c0_3, %c0_4] : memref<1x128xf32, #tpu.memory_space<vmem>>, vector<1x128xf32>
    %cst = arith.constant dense<0.000000e+00> : vector<64x128xf32>
    %3 = tpu.matmul %0, %1, %cst {dimension_numbers = #tpu.dot_dimension_numbers<[1], [0], [0], [1], [0, 0, 1, 1], [], []>} : vector<64x32xbf16>, vector<32x128xbf16>, vector<64x128xf32> -> vector<64x128xf32>
    %4 = vector.broadcast %2 : vector<1x128xf32> to vector<64x128xf32>
    %5 = arith.addf %3, %4 : vector<64x128xf32>
    %c0_5 = arith.constant 0 : index
    %c0_6 = arith.constant 0 : index
    %6 = vector.load %arg4[%c0_5, %c0_6] : memref<128x128xbf16, #tpu.memory_space<vmem>>, vector<128x128xbf16>
    %c0_7 = arith.constant 0 : index
    %c0_8 = arith.constant 0 : index
    %7 = vector.load %arg5[%c0_7, %c0_8] : memref<1x128xf32, #tpu.memory_space<vmem>>, vector<1x128xf32>
    %8 = arith.truncf %5 : vector<64x128xf32> to vector<64x128xbf16>
    %cst_9 = arith.constant dense<0.000000e+00> : vector<64x128xf32>
    %9 = tpu.matmul %8, %6, %cst_9 {dimension_numbers = #tpu.dot_dimension_numbers<[1], [0], [0], [1], [0, 0, 1, 1], [], []>} : vector<64x128xbf16>, vector<128x128xbf16>, vector<64x128xf32> -> vector<64x128xf32>
    %10 = vector.broadcast %7 : vector<1x128xf32> to vector<64x128xf32>
    %11 = arith.addf %9, %10 : vector<64x128xf32>
    %cst_10 = arith.constant 0.000000e+00 : f32
    %12 = vector.broadcast %cst_10 : f32 to vector<64x128xf32>
    %13 = arith.subf %12, %11 : vector<64x128xf32>
    %14 = math.exp %13 : vector<64x128xf32>
    %cst_11 = arith.constant 1.000000e+00 : f32
    %15 = vector.broadcast %cst_11 : f32 to vector<64x128xf32>
    %16 = arith.addf %15, %14 : vector<64x128xf32>
    %17 = tpu.reciprocal %16 {approx = true} : vector<64x128xf32> -> vector<64x128xf32>
    %c0_12 = arith.constant 0 : index
    %c0_13 = arith.constant 0 : index
    %18 = vector.load %arg6[%c0_12, %c0_13] : memref<64x128xf32, #tpu.memory_space<vmem>>, vector<64x128xf32>
    tpu.vector_store %arg6[%c0_12, %c0_13], %17 {strides = array<i32>} : memref<64x128xf32, #tpu.memory_space<vmem>>, vector<64x128xf32>,
    return
  }
  func.func @transform_0(%arg0: i32) -> (i32, i32) {
    %c0_i32 = arith.constant 0 : i32
    %c0_i32_0 = arith.constant 0 : i32
    return %arg0, %c0_i32 : i32, i32
  }
  func.func @transform_1(%arg0: i32) -> (i32, i32) {
    %c0_i32 = arith.constant 0 : i32
    %c0_i32_0 = arith.constant 0 : i32
    %c0_i32_1 = arith.constant 0 : i32
    return %c0_i32, %c0_i32_0 : i32, i32
  }
  func.func @transform_2(%arg0: i32) -> (i32, i32) {
    %c0_i32 = arith.constant 0 : i32
    %c0_i32_0 = arith.constant 0 : i32
    %c0_i32_1 = arith.constant 0 : i32
    return %c0_i32, %c0_i32_0 : i32, i32
  }
  func.func @transform_3(%arg0: i32) -> (i32, i32) {
    %c0_i32 = arith.constant 0 : i32
    %c0_i32_0 = arith.constant 0 : i32
    %c0_i32_1 = arith.constant 0 : i32
    return %c0_i32, %c0_i32_0 : i32, i32
  }
  func.func @transform_4(%arg0: i32) -> (i32, i32) {
    %c0_i32 = arith.constant 0 : i32
    %c0_i32_0 = arith.constant 0 : i32
    %c0_i32_1 = arith.constant 0 : i32
    return %c0_i32, %c0_i32_0 : i32, i32
  }
  func.func @transform_5(%arg0: i32) -> (i32, i32) {
    %c0_i32 = arith.constant 0 : i32
    %c0_i32_0 = arith.constant 0 : i32
    return %arg0, %c0_i32 : i32, i32
  }
}

</mosaic_0001>

<bundles_post_ra>
// kernel: tpu_custom_call.1
= control target key start
LH: loop header
LB: loop body
LE: loop exit
PB: predicated region body
PF: predicated region fallthrough
CT: control target
= control target key end

     0   :  { %10 = vsyncpa [#allocation3], 0  ;;  %s1037_s0 = inlined_call_operand.vmem [shape: bf16[128,32], index: 0, kind: input, shape index: {}]   ;;  %s1038_s1 = inlined_call_operand.vmem [shape: bf16[32,128], index: 1, kind: input, shape index: {}]   ;;  %s1039_s2 = inlined_call_operand.vmem [shape: f32[1,128], index: 2, kind: input, shape index: {}]   ;;  %s1040_s3 = inlined_call_operand.vmem [shape: bf16[128,128], index: 3, kind: input, shape index: {}]   ;;  %s1041_s4 = inlined_call_operand.vmem [shape: f32[1,128], index: 4, kind: input, shape index: {}]   ;;  %s1042_s5 = inlined_call_operand.hbm [shape: f32[128,128], index: 5, kind: output, shape index: {}]  }
   0x1   :  { %12 = vsyncpa [#allocation3 + $0x1], 0  ;;  %s891_s18 = smov 0   ;;  %s893_s19 = smov 0  }
   0x2   :  { %s895_s20 = smov 0   ;;  %s897_s21 = smov 0  }
   0x3 LB: > { %s912_s22 = sadd.s32 4294967295, %s856_s21   ;;  %s620_s23 = sadd.s32 4294967294, %s856_s21   ;;  %s856_s21 = sphi %s897_s21, %s1048_s21   ;;  %s852_s20 = sphi %s895_s20, %s1047_s20   ;;  %s848_s19 = sphi %s893_s19, %s1046_s19   ;;  %s844_s18 = sphi %s891_s18, %s1045_s18  }
   0x4   : > { %s916_s24 = sadd.s32 1, %s856_s21   ;;  %s135_s25 = sadd.s32 1, %s852_s20 }
   0x5   : > { %s132_s26 = ssub.s32 %s856_s21, %s916_s24  ;;  %p145_p0 = scmp.ne.s32.totalorder %s852_s20, %s848_s19 }
   0x6   : > { %p133_p1 = scmp.eq.s32.totalorder %s132_s26, 0  ;;  %p146_p2 = scmp.eq.s32.totalorder %s912_s22, 1 }
   0x7   : > { %p151_p3 = scmp.ne.s32.totalorder %s848_s19, %s844_s18  ;;  %p152_p4 = scmp.eq.s32.totalorder %s620_s23, 1 }
   0x8   : > { %s927_s27 = scalar_select %p133_p1, %s852_s20, %s135_s25  }
   0x9   : > { %p929_p5 = por %p146_p2, %p145_p0  ;;  %p933_p6 = por %p152_p4, %p151_p3 }
   0xa   : > { %p623_p7 = scmp.ge.s32.totalorder %s856_s21, 1  ;;  %p191_p8 = scmp.lt.s32.totalorder %s856_s21, 3 }
   0xc   : > { %p192_p9 = pnand %p623_p7, %p191_p8 }
   0xd   : > { %v748_v0 = vld [vmem:[%s1038_s1] sm:$0xff] (!%p192_p9)   ;;  %s625_s7 = sshll.u32 (!%p192_p9), %s912_s22, 3  ;;  %v749_v1 = vld [vmem:[%s1038_s1 + $0x8] sm:$0xff] (!%p192_p9)   ;;  %vm278_vm0 = vcmask (!%p192_p9), 261120   ;;  %v756_v4 = vld [vmem:[%s1040_s3 + $0x10] sm:$0xff] (!%p192_p9)   ;;  %s216_s23 = sand.u32 (!%p192_p9), 1, %s848_s19  }
   0xe   : > { %195 = sbr.rel (%p192_p9) target bundleno = 514 (0x202), region = 40  ;;  %p220_p10 = scmp.lt.s32.totalorder (!%p192_p9), %s625_s7, 15  ;;  %671 = vmatprep.subr.bf16.mxu0 (!%p192_p9), %v748_v0  ;;  %v754_v2 = vld [vmem:[%s1040_s3] sm:$0xff] (!%p192_p9)   ;;  %v755_v3 = vld [vmem:[%s1040_s3 + $0x8] sm:$0xff] (!%p192_p9)   ;;  %v757_v8 = vld [vmem:[%s1040_s3 + $0x18] sm:$0xff] (!%p192_p9)  }
   0xf   : > { %672 = vmatpush3.bf16.msra.mxu0 (!%p192_p9), %v748_v0  ;;  %683 = vmatprep.subr.bf16.mxu1 (!%p192_p9), %v754_v2  ;;  %v758_v10 = vld [vmem:[%s1040_s3 + $0x20] sm:$0xff] (!%p192_p9)   ;;  %v759_v11 = vld [vmem:[%s1040_s3 + $0x28] sm:$0xff] (!%p192_p9)   ;;  %v760_v12 = vld [vmem:[%s1040_s3 + $0x30] sm:$0xff] (!%p192_p9)   ;;  %s624_s25 = sshll.u32 (!%p192_p9), %s216_s23, 6  ;;  %s652_s30 = sshll.u32 (!%p192_p9), %s912_s22, 10 }
  0x10   : > { %673 = vmatprep.subr.bf16.mxu0 (!%p192_p9), %v749_v1  ;;  %684 = vmatpush3.bf16.msra.mxu1 (!%p192_p9), %v754_v2  ;;  %v761_v13 = vld [vmem:[%s1040_s3 + $0x38] sm:$0xff] (!%p192_p9)   ;;  %v627_v15 = vld [vmem:[%s1039_s2] ss:$0 sm:$0xff] (!%p192_p9)  ;;  %s218_s26 = scalar_lea.vmem (!%p192_p9), [#allocation2], %s624_s25  ;;  %s990_s9 = scalar_lea.hbm (!%p192_p9), %s1042_s5, %s652_s30 }
  0x11   : > { %685 = vmatprep.subr.bf16.mxu1 (!%p192_p9), %v755_v3  ;;  %v638_v35 = vld [vmem:[%s1041_s4] ss:$0 sm:$0xff] (!%p192_p9)  ;;  %s558_s6 = sshll.u32 (!%p192_p9), %s218_s26, 4  ;;  %s996_s22 = scalar_lea.sflag (!%p192_p9), [#allocation3], %s216_s23  ;;  %s992_s6 = int_to_ptr.vmem [resolvable:$true] %s558_s6 }
  0x12   : > { %s794_s10 = scalar_lea.vmem (!%p192_p9), %s992_s6, 1024  ;;  %s858_s11 = smov (!%p192_p9), [#allocation2]  }
  0x13   : > { %674 = vmatpush3.bf16.msra.mxu0 (!%p192_p9), %v749_v1  ;;  %p795_p11 = scmp.ne.s32.totalorder (!%p192_p9), %s992_s6, %s794_s10  ;;  %s798_s12 = sshll.u32 (!%p192_p9), %s858_s11, 4  ;;  %s799_s12 = int_to_ptr.vmem [resolvable:$false] %s798_s12 }
  0x14   : > { %686 = vmatpush3.bf16.msra.mxu1 (!%p192_p9), %v755_v3  ;;  %s800_s13 = scalar_lea.vmem (!%p192_p9), %s799_s12, 2048  ;;  %p801_p0 = scmp.lt.s32.totalorder (!%p192_p9), %s992_s6, %s799_s12 }
  0x15   : > { %s1050_s7 = smov (!%p220_p10, %s625_s7), 15  ;;  %687 = vmatprep.subr.bf16.mxu1 %v756_v4  ;;  %p796_p12 = pnand %p795_p11, %p929_p5 }
  0x16   : > { %s626_s14 = sshll.u32 %s1050_s7, 2  ;;  %p802_p1 = scmp.lt.s32.totalorder %s800_s13, %s794_s10 }
  0x17   : > { %s223_s17 = scalar_lea.vmem %s1037_s0, %s626_s14  ;;  %p797_p13 = pneg %p796_p12 }
  0x18   : > { %v750_v5 = vld [vmem:[%s223_s17] sm:$0xff]   ;;  %v751_v6 = vld [vmem:[%s223_s17 + $0x8] sm:$0xff]   ;;  %v752_v7 = vld [vmem:[%s223_s17 + $0x10] sm:$0xff]   ;;  %688 = vmatpush3.bf16.msra.mxu1 %v756_v4  ;;  %p803_p2 = por %p802_p1, %p801_p0 }
  0x19   : > { %675 = vmatprep.mubr.msk.bf16.mxu0 %vm278_vm0, %v750_v5  ;;  %v753_v9 = vld [vmem:[%s223_s17 + $0x18] sm:$0xff]   ;;  %689 = vmatprep.subr.bf16.mxu1 %v757_v8 }
  0x1a   : > { %676 = vmatmul.mubr.msk.bf16.vlgmr.msra.gmra.mrb[0].mxu0 %vm278_vm0, %v751_v6  ;;  %p804_p3 = pnand %p803_p2, %p797_p13 }
  0x1b   : > { %679 = vmatprep.mubr.msk.bf16.mxu0 %vm278_vm0, %v752_v7 }
  0x1c   : > { %690 = vmatpush3.bf16.msra.mxu1 %v757_v8 }
  0x1d   : > { %691 = vmatprep.subr.bf16.mxu1 %v758_v10 }
  0x20   : > { %692 = vmatpush3.bf16.msra.mxu1 %v758_v10 }
  0x21   : > { %693 = vmatprep.subr.bf16.mxu1 %v759_v11 }
  0x22   : > { %680 = vmatmul.mubr.msk.bf16.gmra.mrb[4].mxu0 %vm278_vm0, %v753_v9 }
  0x24   : > { %694 = vmatpush3.bf16.msra.mxu1 %v759_v11 }
  0x25   : > { %695 = vmatprep.subr.bf16.mxu1 %v760_v12 }
  0x28   : > { %696 = vmatpush3.bf16.msra.mxu1 %v760_v12 }
  0x29   : > { %697 = vmatprep.subr.bf16.mxu1 %v761_v13 }
  0x2c   : > { %698 = vmatpush3.bf16.msra.mxu1 %v761_v13 }
  0xed   : > { %v677_v14 = vpop.f32.mrb[0].mxu0 }
  0xee   : > { %v325_v16 = vpop.f32.mrb[1].mxu0  ;;  %v334_v18 = vadd.f32 %v677_v14, %v627_v15 }
  0xef   : > { %v678_v17 = vpop.f32.mrb[2].mxu0  ;;  %v326_v21 = vadd.f32 %v627_v15, %v325_v16 }
  0xf0   : > { %v337_v19 = vadd.f32 %v678_v17, %v627_v15  ;;  %v328_v20 = vpop.f32.mrb[3].mxu0 }
  0xf1   : > { %v329_v22 = vadd.f32 %v627_v15, %v328_v20 }
  0xf2   : > { %v374_v23 = vpack.c.bf16 %v337_v19, %v334_v18 }
  0xf3   : > { %v373_v24 = vpack.c.bf16 %v329_v22, %v326_v21 }
  0xf5   : > { %v681_v25 = vpop.f32.mrb[4].mxu0  ;;  %699 = vmatprep.mubr.bf16.mxu1 %v373_v24 }
  0xf6   : > { %v341_v26 = vpop.f32.mrb[5].mxu0  ;;  %700 = vmatmul.mubr.bf16.vlgmr.msra.gmra.mrb[0].mxu1 %v374_v23  ;;  %v350_v28 = vadd.f32 %v681_v25, %v627_v15 }
  0xf7   : > { %v682_v27 = vpop.f32.mrb[6].mxu0  ;;  %v342_v31 = vadd.f32 %v627_v15, %v341_v26 }
  0xf8   : > { %v353_v29 = vadd.f32 %v682_v27, %v627_v15  ;;  %v344_v30 = vpop.f32.mrb[7].mxu0 }
  0xf9   : > { %v345_v32 = vadd.f32 %v627_v15, %v344_v30 }
  0xfa   : > { %v376_v33 = vpack.c.bf16 %v353_v29, %v350_v28 }
  0xfb   : > { %v375_v34 = vpack.c.bf16 %v345_v32, %v342_v31 }
  0xfd   : > { %703 = vmatprep.mubr.bf16.mxu1 %v375_v34 }
  0xfe   : > { %704 = vmatmul.mubr.bf16.gmra.mrb[4].mxu1 %v376_v33 }
 0x1c9   : > { %v701_v36 = vpop.f32.mrb[0].mxu1 }
 0x1ca   : > { %v474_v37 = vadd.f32 %v701_v36, %v638_v35  ;;  %v465_v38 = vpop.f32.mrb[1].mxu1 }
 0x1cb   : > { %v466_v39 = vadd.f32 %v638_v35, %v465_v38  ;;  %v702_v40 = vpop.f32.mrb[2].mxu1 }
 0x1cc   : > { %v498_v41 = vsub.f32 0.0, %v474_v37  ;;  %v477_v42 = vadd.f32 %v702_v40, %v638_v35  ;;  %v468_v43 = vpop.f32.mrb[3].mxu1 }
 0x1cd   : > { %v496_v44 = vsub.f32 0.0, %v466_v39  ;;  %v469_v45 = vadd.f32 %v638_v35, %v468_v43 }
 0x1ce   : > { %v508_v46 = vmul.f32 1.442695, %v498_v41  ;;  %v499_v47 = vsub.f32 0.0, %v477_v42 }
 0x1cf   : > { %v504_v48 = vmul.f32 1.442695, %v496_v44  ;;  %v497_v49 = vsub.f32 0.0, %v469_v45 }
 0x1d0   : > { %762 = vpow2.f32 %v508_v46  ;;  %v510_v50 = vmul.f32 1.442695, %v499_v47 }
 0x1d1   : > { %764 = vpow2.f32 %v504_v48  ;;  %v506_v51 = vmul.f32 1.442695, %v497_v49  ;;  %v705_v52 = vpop.f32.mrb[4].mxu1 }
 0x1d2   : > { %766 = vpow2.f32 %v510_v50  ;;  %v490_v53 = vadd.f32 %v705_v52, %v638_v35  ;;  %v481_v54 = vpop.f32.mrb[5].mxu1 }
 0x1d3   : > { %768 = vpow2.f32 %v506_v51  ;;  %v482_v55 = vadd.f32 %v638_v35, %v481_v54  ;;  %v706_v56 = vpop.f32.mrb[6].mxu1 }
 0x1d4   : > { %v502_v57 = vsub.f32 0.0, %v490_v53  ;;  %v493_v58 = vadd.f32 %v706_v56, %v638_v35  ;;  %v484_v59 = vpop.f32.mrb[7].mxu1 }
 0x1d5   : > { %v500_v60 = vsub.f32 0.0, %v482_v55  ;;  %v485_v61 = vadd.f32 %v638_v35, %v484_v59 }
 0x1d6   : > { %v516_v62 = vmul.f32 1.442695, %v502_v57  ;;  %v503_v63 = vsub.f32 0.0, %v493_v58 }
 0x1d7   : > { %v512_v0 = vmul.f32 1.442695, %v500_v60  ;;  %v501_v1 = vsub.f32 0.0, %v485_v61 }
 0x1d8   : > { %770 = vpow2.f32 %v516_v62  ;;  %v518_v2 = vmul.f32 1.442695, %v503_v63 }
 0x1d9   : > { %772 = vpow2.f32 %v512_v0  ;;  %v514_v3 = vmul.f32 1.442695, %v501_v1 }
 0x1da   : > { %v763_v4 = vpop.eup %762  ;;  %774 = vpow2.f32 %v518_v2 }
 0x1db   : > { %v765_v5 = vpop.eup %764  ;;  %v522_v6 = vadd.f32 1.0, %v763_v4  ;;  %776 = vpow2.f32 %v514_v3 }
 0x1dc   : > { %v767_v7 = vpop.eup %766  ;;  %v520_v8 = vadd.f32 1.0, %v765_v5 }
 0x1dd   : > { %v769_v9 = vpop.eup %768  ;;  %778 = vrcp.f32 %v522_v6  ;;  %v523_v10 = vadd.f32 1.0, %v767_v7 }
 0x1de   : > { %780 = vrcp.f32 %v520_v8  ;;  %v521_v11 = vadd.f32 1.0, %v769_v9 }
 0x1df   : > { %782 = vrcp.f32 %v523_v10 }
 0x1e0   : > { %784 = vrcp.f32 %v521_v11 }
 0x1e2   : > { %v771_v12 = vpop.eup %770 }
 0x1e3   : > { %v773_v13 = vpop.eup %772  ;;  %v526_v14 = vadd.f32 1.0, %v771_v12 }
 0x1e4   : > { %v775_v15 = vpop.eup %774  ;;  %v524_v16 = vadd.f32 1.0, %v773_v13 }
 0x1e5   : > { %v777_v17 = vpop.eup %776  ;;  %786 = vrcp.f32 %v526_v14  ;;  %v527_v18 = vadd.f32 1.0, %v775_v15 }
 0x1e6   : > { %788 = vrcp.f32 %v524_v16  ;;  %v525_v19 = vadd.f32 1.0, %v777_v17 }
 0x1e7   : > { %v779_v20 = vpop.eup %778  ;;  %790 = vrcp.f32 %v527_v18 }
 0x1e8   : > { %v781_v21 = vpop.eup %780  ;;  %538 = vst [vmem:[%s218_s26 + $0x10] sm:$0xff] %v779_v20  ;;  %792 = vrcp.f32 %v525_v19 }
 0x1e9   : > { %v783_v22 = vpop.eup %782  ;;  %536 = vst [vmem:[%s218_s26] sm:$0xff] %v781_v21 }
 0x1ea   : > { %v785_v23 = vpop.eup %784  ;;  %539 = vst [vmem:[%s218_s26 + $0x18] sm:$0xff] %v783_v22 }
 0x1eb   : > { %537 = vst [vmem:[%s218_s26 + $0x8] sm:$0xff] %v785_v23 }
 0x1ef   : > { %v787_v24 = vpop.eup %786 }
 0x1f0   : > { %v789_v25 = vpop.eup %788  ;;  %542 = vst [vmem:[%s218_s26 + $0x30] sm:$0xff] %v787_v24 }
 0x1f1   : > { %v791_v26 = vpop.eup %790  ;;  %540 = vst [vmem:[%s218_s26 + $0x20] sm:$0xff] %v789_v25 }
 0x1f2   : > { %v793_v27 = vpop.eup %792  ;;  %543 = vst [vmem:[%s218_s26 + $0x38] sm:$0xff] %v791_v26 }
 0x1f3   : > { %541 = vst [vmem:[%s218_s26 + $0x28] sm:$0xff] %v793_v27 }
 0x1f4   : > { %807 = shalt.err (!%p804_p3)
}
 0x1f5   : > { %s808_s14 = scalar_lea.hbm %s990_s9, 1024  ;;  %s812_s17 = scalar_lea.hbm %s1042_s5, 2048 }
 0x1f6   : > { %p809_p4 = scmp.ne.s32.totalorder %s990_s9, %s808_s14  ;;  %p813_p9 = scmp.lt.u32.totalorder %s990_s9, %s1042_s5 }
 0x1f7   : > { %p814_p10 = scmp.lt.u32.totalorder %s812_s17, %s808_s14  ;;  %p816_p12 = scmp.lt.u32.totalorder %s808_s14, %s990_s9 }
 0x1f8   : > { %p810_p7 = pnand %p809_p4, %p929_p5 }
 0x1f9   : > { %p815_p11 = por %p814_p10, %p813_p9 }
 0x1fa   : > { %p811_p8 = pneg %p810_p7 }
 0x1fb   : > { %p817_p13 = por %p816_p12, %p815_p11 }
 0x1fd   : > { %p818_p0 = pnand %p817_p13, %p811_p8 }
 0x1ff   : > { %821 = shalt.err (!%p818_p0)
}
 0x200   : > { %s859_s26 = smov 128   ;;  %s860_s30 = smov 8  }
 0x201   : > { %707 = dma.vmem_to_hbm [thread:$0]  (%p929_p5), %s992_s6, 1024, %s990_s9, %s996_s22, %s859_s26, %s859_s26, %s860_s30  }
 0x202 PF: > { %p713_p1 = scmp.ge.s32.totalorder %s856_s21, 2  ;;  %s573_s7 = sand.u32 1, %s844_s18  }
 0x203   : > { %s574_s8 = scalar_lea.sflag [#allocation3], %s573_s7 }
 0x204   : > { %p710_p2 = pnand %p713_p1, %p933_p6 }
 0x206   : > { %839 = dma.done.wait (!%p710_p2), %s574_s8, 1024  }
 0x207   : > { %841 = vsyncadd (!%p710_p2), %s574_s8, 4294966272  ;;  %p15_p3 = scmp.ge.s32.totalorder %s916_s24, 4   ;;  %s1045_s18 = smov %s848_s19 }
 0x208   : > { %s1046_s19 = smov %s852_s20  ;;  %s1047_s20 = smov %s927_s27 }
 0x209   : > { %s1048_s21 = smov %s916_s24  ;;  %17 = sbr.rel (!%p15_p3) target bundleno = 3 (0x3), region = 75 }
 0x210   :  { %579 = vsyncpa [#allocation3], 1 }
 0x211   :  { %581 = vsyncpa [#allocation3 + $0x1], 1 }

</bundles_post_ra>
